<compile_context>
chip_gen: v7x
topology: tpu7x:2x2x1
jax: 0.10.0
libtpu: 0.0.40
codegen_flags: <defaults>
</compile_context>

<pallas_src>
import functools

import jax
import jax.numpy as jnp
from jax import lax
from jax.experimental import pallas as pl
from jax.experimental.pallas import tpu as pltpu


def _round_up(x, m):
    return (x + m - 1) // m * m


def _pointnetfeat2_kernel(x_ref, w1_ref, b1_ref, w2_ref, b2_ref, o_ref, acc_ref,
                          *, n_points, tile_n, tiles_per_chunk, mask_tail):
    """One (chunk, batch, point-tile) grid step.

    x_ref  : (Cin, TN)  bf16 point tile, N on lanes (batch dim squeezed)
    w1_ref : (S, Cin)   bf16 conv1 weight with BN1 scale folded in
    b1_ref : (S, 1)     f32 folded BN1 bias (incl. conv1 bias)
    w2_ref : (D, S)     bf16 conv2 weight with BN2 scale folded in
    b2_ref : (D, 1)     f32 folded BN2 bias (incl. conv2 bias)
    o_ref  : (D, 1)     per-(batch, chunk) partial max (written once, at last tile)
    acc_ref: (D, 1)     running-max VMEM scratch
    """
    c = pl.program_id(0)          # point super-chunk (TensorCore split)
    k = pl.program_id(2)          # point tile within chunk (reduction axis)

    @pl.when(k == 0)
    def _():
        acc_ref[...] = jnp.full(acc_ref.shape, -jnp.inf, acc_ref.dtype)

    x = x_ref[...]                                                     # (Cin, TN) bf16
    h = jnp.dot(w1_ref[...], x, preferred_element_type=jnp.float32)    # (S, TN) f32
    h = jnp.maximum(h + b1_ref[...], 0.0)                              # bias + ReLU
    y = jnp.dot(w2_ref[...], h.astype(jnp.bfloat16),
                preferred_element_type=jnp.float32)                    # (D, TN) f32
    y = y + b2_ref[...]

    if mask_tail:
        # Only tiles that reach into the padded region pay the mask cost.
        global_tile = c * tiles_per_chunk + k
        in_tail = (global_tile + 1) * tile_n > n_points

        @pl.when(in_tail)
        def _():
            remaining = n_points - global_tile * tile_n   # may be <= 0 (all-pad tile)
            col = lax.broadcasted_iota(jnp.int32, y.shape, 1)
            ym = jnp.where(col < remaining, y, -jnp.inf)
            acc_ref[...] = jnp.maximum(acc_ref[...],
                                       jnp.max(ym, axis=1, keepdims=True))

        @pl.when(jnp.logical_not(in_tail))
        def _():
            acc_ref[...] = jnp.maximum(acc_ref[...],
                                       jnp.max(y, axis=1, keepdims=True))
    else:
        acc_ref[...] = jnp.maximum(acc_ref[...],
                                   jnp.max(y, axis=1, keepdims=True))

    @pl.when(k == pl.num_programs(2) - 1)
    def _():
        o_ref[...] = acc_ref[...]


@functools.partial(jax.jit, static_argnames=("tile_n", "point_chunks"))
def pointnetfeat2_forward(x_nchw, params, *, tile_n=32768, point_chunks=2):
    """x_nchw: (B, 1, Cin, N) like the PyTorch module. Returns (B, 1, out_dim)."""
    (w1, b1c, g1, beta1, m1, v1,
     w2, b2c, g2, beta2, m2, v2) = params
    eps = 1e-5

    # ---- glue: native layout + BN folding into the weights (plain JAX) ----
    x = jnp.squeeze(x_nchw, axis=1)                 # (B, Cin, N)  -- no transpose
    B, Cin, N = x.shape
    S = w1.shape[0]
    D = w2.shape[0]

    s1 = g1 / jnp.sqrt(v1 + eps)                                # (S,)
    w1f = (w1 * s1[:, None]).astype(jnp.bfloat16)               # (S, Cin)
    b1f = (beta1 + (b1c - m1) * s1).reshape(S, 1).astype(jnp.float32)
    s2 = g2 / jnp.sqrt(v2 + eps)                                # (D,)
    w2f = (w2 * s2[:, None]).astype(jnp.bfloat16)               # (D, S)
    b2f = (beta2 + (b2c - m2) * s2).reshape(D, 1).astype(jnp.float32)

    # Tile the point axis; keep tiles lane-aligned (multiple of 128).
    tn = min(int(tile_n), _round_up(N, 128))
    tn = _round_up(tn, 128)
    total_tiles = (N + tn - 1) // tn
    nchunks = max(1, min(int(point_chunks), total_tiles))
    tiles_per_chunk = (total_tiles + nchunks - 1) // nchunks
    n_pad = nchunks * tiles_per_chunk * tn

    x = x.astype(jnp.bfloat16)
    if n_pad != N:
        x = jnp.pad(x, ((0, 0), (0, 0), (0, n_pad - N)))

    kernel = functools.partial(
        _pointnetfeat2_kernel,
        n_points=N, tile_n=tn, tiles_per_chunk=tiles_per_chunk,
        mask_tail=(n_pad != N))

    partial_max = pl.pallas_call(
        kernel,
        out_shape=jax.ShapeDtypeStruct((B, nchunks, D, 1), jnp.float32),
        grid_spec=pltpu.PrefetchScalarGridSpec(
            num_scalar_prefetch=0,
            grid=(nchunks, B, tiles_per_chunk),
            in_specs=[
                pl.BlockSpec((None, Cin, tn),
                             lambda c, b, k: (b, 0, c * tiles_per_chunk + k)),
                pl.BlockSpec((S, Cin), lambda c, b, k: (0, 0)),
                pl.BlockSpec((S, 1), lambda c, b, k: (0, 0)),
                pl.BlockSpec((D, S), lambda c, b, k: (0, 0)),
                pl.BlockSpec((D, 1), lambda c, b, k: (0, 0)),
            ],
            out_specs=pl.BlockSpec((None, None, D, 1),
                                   lambda c, b, k: (b, c, 0, 0)),
            scratch_shapes=[pltpu.VMEM((D, 1), jnp.float32)],
        ),
        compiler_params=pltpu.CompilerParams(
            dimension_semantics=("parallel", "parallel", "arbitrary"),
            vmem_limit_bytes=48 * 1024 * 1024),
    )(x, w1f, b1f, w2f, b2f)

    # Combine per-chunk partial maxes (max is associative); (B, nchunks, D, 1) -> (B, D, 1)
    out = jnp.max(partial_max, axis=1)
    # (B, D, 1) -> (B, 1, D): metadata-only reshape matching the PyTorch output shape.
    return jnp.reshape(out, (B, 1, D))


def make_params(key, input_dim, shallow_dim, out_dim):
    """Deterministic synthetic parameters matching the PyTorch module shapes."""
    ks = jax.random.split(key, 8)
    w1 = jax.random.normal(ks[0], (shallow_dim, input_dim), jnp.float32) * 0.2
    b1c = jax.random.normal(ks[1], (shallow_dim,), jnp.float32) * 0.05
    g1 = 1.0 + 0.1 * jax.random.normal(ks[2], (shallow_dim,), jnp.float32)
    beta1 = 0.05 * jax.random.normal(ks[3], (shallow_dim,), jnp.float32)
    m1 = 0.01 * jax.random.normal(ks[4], (shallow_dim,), jnp.float32)
    v1 = 1.0 + 0.1 * jnp.abs(jax.random.normal(ks[5], (shallow_dim,), jnp.float32))

    w2 = jax.random.normal(ks[6], (out_dim, shallow_dim), jnp.float32) * 0.2
    b2c = jax.random.normal(ks[7], (out_dim,), jnp.float32) * 0.05
    g2 = jnp.ones((out_dim,), jnp.float32)
    beta2 = jnp.zeros((out_dim,), jnp.float32)
    m2 = jnp.zeros((out_dim,), jnp.float32)
    v2 = jnp.ones((out_dim,), jnp.float32)
    return (w1, b1c, g1, beta1, m1, v1, w2, b2c, g2, beta2, m2, v2)


def reference_forward(x_nchw, params):
    """Pure-jnp f32 reference of the PyTorch forward (eval-mode BN)."""
    (w1, b1c, g1, beta1, m1, v1, w2, b2c, g2, beta2, m2, v2) = params
    eps = 1e-5
    x = jnp.squeeze(x_nchw, axis=1)                              # (B, Cin, N)
    h = jnp.einsum('oc,bcn->bon', w1, x) + b1c[None, :, None]    # conv1 (k=1)
    h = g1[None, :, None] * (h - m1[None, :, None]) / jnp.sqrt(v1 + eps)[None, :, None] \
        + beta1[None, :, None]
    h = jnp.maximum(h, 0.0)
    y = jnp.einsum('os,bsn->bon', w2, h) + b2c[None, :, None]    # conv2 (k=1)
    y = g2[None, :, None] * (y - m2[None, :, None]) / jnp.sqrt(v2 + eps)[None, :, None] \
        + beta2[None, :, None]
    y = jnp.max(y, axis=2)                                       # (B, D)
    return y[:, None, :]                                         # (B, 1, D)


if __name__ == "__main__":
    # Small shapes consistent with the module: x is (B, 1, input_dim, n_pts).
    B, input_dim, shallow_dim, mid_dim, out_dim = 2, 4, 32, 16, 64
    # NOTE: mid_dim is unused by the PyTorch module's layers, mirrored here.

    key = jax.random.PRNGKey(0)
    kx1, kx2, kx3, kp = jax.random.split(key, 4)
    params = make_params(kp, input_dim, shallow_dim, out_dim)

    # bf16 matmul operands (f32 accumulation) -> relaxed tolerance vs the f32 reference.
    ATOL = 5e-2
    RTOL = 5e-2

    # Case 1: ragged point count, single tile / single chunk (pad + in-kernel tail mask).
    n_pts1 = 300
    x1 = jax.random.normal(kx1, (B, 1, input_dim, n_pts1), jnp.float32)
    out1 = jax.block_until_ready(pointnetfeat2_forward(x1, params))
    ref1 = reference_forward(x1, params)
    assert out1.shape == (B, 1, out_dim), out1.shape
    if not jnp.allclose(out1, ref1, atol=ATOL, rtol=RTOL):
        raise AssertionError("Pallas kernel mismatch vs reference (ragged N)")

    # Case 2: multiple tiles + 2 point chunks, exact tile multiple (no masking).
    n_pts2 = 512
    x2 = jax.random.normal(kx2, (B, 1, input_dim, n_pts2), jnp.float32)
    out2 = jax.block_until_ready(pointnetfeat2_forward(x2, params, tile_n=128))
    ref2 = reference_forward(x2, params)
    assert out2.shape == (B, 1, out_dim), out2.shape
    if not jnp.allclose(out2, ref2, atol=ATOL, rtol=RTOL):
        raise AssertionError("Pallas kernel mismatch vs reference (multi-tile)")

    # Case 3: ragged + 2 chunks (exercises a partially padded tile AND an all-pad tile).
    n_pts3 = 300
    x3 = jax.random.normal(kx3, (B, 1, input_dim, n_pts3), jnp.float32)
    out3 = jax.block_until_ready(pointnetfeat2_forward(x3, params, tile_n=128))
    ref3 = reference_forward(x3, params)
    assert out3.shape == (B, 1, out_dim), out3.shape
    if not jnp.allclose(out3, ref3, atol=ATOL, rtol=RTOL):
        raise AssertionError("Pallas kernel mismatch vs reference (ragged + chunks)")

    print("KERNEL_OK")
</pallas_src>

<mosaic_0001>
module attributes {stable_mosaic.version = 11 : i64} {
  func.func @_pointnetfeat2_kernel(%arg0: i32, %arg1: i32, %arg2: i32, %arg3: memref<1x4x384xbf16, #tpu.memory_space<vmem>>, %arg4: memref<32x4xbf16, #tpu.memory_space<vmem>>, %arg5: memref<32x1xf32, #tpu.memory_space<vmem>>, %arg6: memref<64x32xbf16, #tpu.memory_space<vmem>>, %arg7: memref<64x1xf32, #tpu.memory_space<vmem>>, %arg8: memref<1x1x64x1xf32, #tpu.memory_space<vmem>>, %arg9: memref<64x1xf32, #tpu.memory_space<vmem>>) attributes {dimension_semantics = [#tpu.dimension_semantics<parallel>, #tpu.dimension_semantics<parallel>, #tpu.dimension_semantics<arbitrary>], iteration_bounds = array<i64: 1, 2, 1>, scalar_prefetch = 0 : i64, scratch_operands = 1 : i64, tpu.core_type = #tpu.core_type<tc>, window_params = [{transform_indices = @transform_0, window_bounds = array<i64: 1, 4, 384>}, {pipeline_mode = #tpu.pipeline_mode<synchronous>, transform_indices = @transform_1, window_bounds = array<i64: 32, 4>}, {pipeline_mode = #tpu.pipeline_mode<synchronous>, transform_indices = @transform_2, window_bounds = array<i64: 32, 1>}, {pipeline_mode = #tpu.pipeline_mode<synchronous>, transform_indices = @transform_3, window_bounds = array<i64: 64, 32>}, {pipeline_mode = #tpu.pipeline_mode<synchronous>, transform_indices = @transform_4, window_bounds = array<i64: 64, 1>}, {transform_indices = @transform_5, window_bounds = array<i64: 1, 1, 64, 1>}]} {
    %c0_i32 = arith.constant 0 : i32
    %0 = arith.cmpi eq, %arg2, %c0_i32 : i32
    %1 = arith.extui %0 : i1 to i32
    %c0_i32_0 = arith.constant 0 : i32
    %2 = arith.cmpi ne, %1, %c0_i32_0 : i32
    scf.if %2 {
      %cst_18 = arith.constant 0xFF800000 : f32
      %31 = vector.broadcast %cst_18 : f32 to vector<64x1xf32>
      %c0_19 = arith.constant 0 : index
      %c0_20 = arith.constant 0 : index
      %32 = vector.load %arg9[%c0_19, %c0_20] : memref<64x1xf32, #tpu.memory_space<vmem>>, vector<64x1xf32>
      tpu.vector_store %arg9[%c0_19, %c0_20], %31 {strides = array<i32>} : memref<64x1xf32, #tpu.memory_space<vmem>>, vector<64x1xf32>,
    } else {
    }
    %c0 = arith.constant 0 : index
    %c0_1 = arith.constant 0 : index
    %c0_2 = arith.constant 0 : index
    %3 = vector.load %arg3[%c0, %c0_1, %c0_2] : memref<1x4x384xbf16, #tpu.memory_space<vmem>>, vector<1x4x384xbf16>
    %4 = vector.shape_cast %3 : vector<1x4x384xbf16> to vector<4x384xbf16>
    %c0_3 = arith.constant 0 : index
    %c0_4 = arith.constant 0 : index
    %5 = vector.load %arg4[%c0_3, %c0_4] : memref<32x4xbf16, #tpu.memory_space<vmem>>, vector<32x4xbf16>
    %cst = arith.constant dense<0.000000e+00> : vector<32x384xf32>
    %6 = tpu.matmul %5, %4, %cst {dimension_numbers = #tpu.dot_dimension_numbers<[1], [0], [0], [1], [0, 0, 1, 1], [], []>} : vector<32x4xbf16>, vector<4x384xbf16>, vector<32x384xf32> -> vector<32x384xf32>
    %c0_5 = arith.constant 0 : index
    %c0_6 = arith.constant 0 : index
    %7 = vector.load %arg5[%c0_5, %c0_6] : memref<32x1xf32, #tpu.memory_space<vmem>>, vector<32x1xf32>
    %8 = vector.broadcast %7 : vector<32x1xf32> to vector<32x384xf32>
    %9 = arith.addf %6, %8 : vector<32x384xf32>
    %cst_7 = arith.constant 0.000000e+00 : f32
    %10 = vector.broadcast %cst_7 : f32 to vector<32x384xf32>
    %11 = arith.maximumf %9, %10 : vector<32x384xf32>
    %c0_8 = arith.constant 0 : index
    %c0_9 = arith.constant 0 : index
    %12 = vector.load %arg6[%c0_8, %c0_9] : memref<64x32xbf16, #tpu.memory_space<vmem>>, vector<64x32xbf16>
    %13 = arith.truncf %11 : vector<32x384xf32> to vector<32x384xbf16>
    %cst_10 = arith.constant dense<0.000000e+00> : vector<64x384xf32>
    %14 = tpu.matmul %12, %13, %cst_10 {dimension_numbers = #tpu.dot_dimension_numbers<[1], [0], [0], [1], [0, 0, 1, 1], [], []>} : vector<64x32xbf16>, vector<32x384xbf16>, vector<64x384xf32> -> vector<64x384xf32>
    %c0_11 = arith.constant 0 : index
    %c0_12 = arith.constant 0 : index
    %15 = vector.load %arg7[%c0_11, %c0_12] : memref<64x1xf32, #tpu.memory_space<vmem>>, vector<64x1xf32>
    %16 = vector.broadcast %15 : vector<64x1xf32> to vector<64x384xf32>
    %17 = arith.addf %14, %16 : vector<64x384xf32>
    %c1_i32 = arith.constant 1 : i32
    %18 = arith.muli %arg0, %c1_i32 : i32
    %19 = arith.addi %18, %arg2 : i32
    %c1_i32_13 = arith.constant 1 : i32
    %20 = arith.addi %19, %c1_i32_13 : i32
    %c384_i32 = arith.constant 384 : i32
    %21 = arith.muli %20, %c384_i32 : i32
    %c300_i32 = arith.constant 300 : i32
    %22 = arith.cmpi sgt, %21, %c300_i32 : i32
    %23 = arith.extui %22 : i1 to i32
    %c0_i32_14 = arith.constant 0 : i32
    %24 = arith.cmpi ne, %23, %c0_i32_14 : i32
    scf.if %24 {
      %c384_i32_18 = arith.constant 384 : i32
      %31 = arith.muli %19, %c384_i32_18 : i32
      %c300_i32_19 = arith.constant 300 : i32
      %32 = arith.subi %c300_i32_19, %31 : i32
      %33 = tpu.iota {dimensions = array<i32: 1>} : vector<64x384xi32>
      %34 = vector.broadcast %32 : i32 to vector<64x384xi32>
      %35 = arith.cmpi slt, %33, %34 : vector<64x384xi32>
      %cst_20 = arith.constant 0xFF800000 : f32
      %36 = vector.broadcast %cst_20 : f32 to vector<64x384xf32>
      %37 = arith.select %35, %17, %36 : vector<64x384xi1>, vector<64x384xf32>
      %c0_21 = arith.constant 0 : index
      %c0_22 = arith.constant 0 : index
      %38 = vector.load %arg9[%c0_21, %c0_22] : memref<64x1xf32, #tpu.memory_space<vmem>>, vector<64x1xf32>
      %cst_23 = arith.constant dense<0xFF800000> : vector<64xf32>
      %39 = vector.multi_reduction <maximumf>, %37, %cst_23 [1] : vector<64x384xf32> to vector<64xf32>
      %40 = vector.shape_cast %39 : vector<64xf32> to vector<64x1xf32>
      %41 = arith.maximumf %38, %40 : vector<64x1xf32>
      %c0_24 = arith.constant 0 : index
      %c0_25 = arith.constant 0 : index
      %42 = vector.load %arg9[%c0_24, %c0_25] : memref<64x1xf32, #tpu.memory_space<vmem>>, vector<64x1xf32>
      tpu.vector_store %arg9[%c0_24, %c0_25], %41 {strides = array<i32>} : memref<64x1xf32, #tpu.memory_space<vmem>>, vector<64x1xf32>,
    } else {
    }
    %true = arith.constant true
    %25 = arith.xori %22, %true : i1
    %26 = arith.extui %25 : i1 to i32
    %c0_i32_15 = arith.constant 0 : i32
    %27 = arith.cmpi ne, %26, %c0_i32_15 : i32
    scf.if %27 {
      %c0_18 = arith.constant 0 : index
      %c0_19 = arith.constant 0 : index
      %31 = vector.load %arg9[%c0_18, %c0_19] : memref<64x1xf32, #tpu.memory_space<vmem>>, vector<64x1xf32>
      %cst_20 = arith.constant dense<0xFF800000> : vector<64xf32>
      %32 = vector.multi_reduction <maximumf>, %17, %cst_20 [1] : vector<64x384xf32> to vector<64xf32>
      %33 = vector.shape_cast %32 : vector<64xf32> to vector<64x1xf32>
      %34 = arith.maximumf %31, %33 : vector<64x1xf32>
      %c0_21 = arith.constant 0 : index
      %c0_22 = arith.constant 0 : index
      %35 = vector.load %arg9[%c0_21, %c0_22] : memref<64x1xf32, #tpu.memory_space<vmem>>, vector<64x1xf32>
      tpu.vector_store %arg9[%c0_21, %c0_22], %34 {strides = array<i32>} : memref<64x1xf32, #tpu.memory_space<vmem>>, vector<64x1xf32>,
    } else {
    }
    %c0_i32_16 = arith.constant 0 : i32
    %28 = arith.cmpi eq, %arg2, %c0_i32_16 : i32
    %29 = arith.extui %28 : i1 to i32
    %c0_i32_17 = arith.constant 0 : i32
    %30 = arith.cmpi ne, %29, %c0_i32_17 : i32
    scf.if %30 {
      %c0_18 = arith.constant 0 : index
      %c0_19 = arith.constant 0 : index
      %31 = vector.load %arg9[%c0_18, %c0_19] : memref<64x1xf32, #tpu.memory_space<vmem>>, vector<64x1xf32>
      %c0_20 = arith.constant 0 : index
      %c0_21 = arith.constant 0 : index
      %c0_22 = arith.constant 0 : index
      %c0_23 = arith.constant 0 : index
      %32 = vector.load %arg8[%c0_20, %c0_21, %c0_22, %c0_23] : memref<1x1x64x1xf32, #tpu.memory_space<vmem>>, vector<1x1x64x1xf32>
      %33 = vector.shape_cast %32 : vector<1x1x64x1xf32> to vector<64x1xf32>
      %34 = vector.shape_cast %31 : vector<64x1xf32> to vector<1x1x64x1xf32>
      tpu.vector_store %arg8[%c0_20, %c0_21, %c0_22, %c0_23], %34 {strides = array<i32>} : memref<1x1x64x1xf32, #tpu.memory_space<vmem>>, vector<1x1x64x1xf32>,
    } else {
    }
    return
  }
  func.func @transform_0(%arg0: i32, %arg1: i32, %arg2: i32) -> (i32, i32, i32) {
    %c1_i32 = arith.constant 1 : i32
    %0 = arith.muli %arg0, %c1_i32 : i32
    %1 = arith.addi %0, %arg2 : i32
    %c0_i32 = arith.constant 0 : i32
    %c0_i32_0 = arith.constant 0 : i32
    return %arg1, %c0_i32, %1 : i32, i32, i32
  }
  func.func @transform_1(%arg0: i32, %arg1: i32, %arg2: i32) -> (i32, i32) {
    %c0_i32 = arith.constant 0 : i32
    %c0_i32_0 = arith.constant 0 : i32
    %c0_i32_1 = arith.constant 0 : i32
    return %c0_i32, %c0_i32_0 : i32, i32
  }
  func.func @transform_2(%arg0: i32, %arg1: i32, %arg2: i32) -> (i32, i32) {
    %c0_i32 = arith.constant 0 : i32
    %c0_i32_0 = arith.constant 0 : i32
    %c0_i32_1 = arith.constant 0 : i32
    return %c0_i32, %c0_i32_0 : i32, i32
  }
  func.func @transform_3(%arg0: i32, %arg1: i32, %arg2: i32) -> (i32, i32) {
    %c0_i32 = arith.constant 0 : i32
    %c0_i32_0 = arith.constant 0 : i32
    %c0_i32_1 = arith.constant 0 : i32
    return %c0_i32, %c0_i32_0 : i32, i32
  }
  func.func @transform_4(%arg0: i32, %arg1: i32, %arg2: i32) -> (i32, i32) {
    %c0_i32 = arith.constant 0 : i32
    %c0_i32_0 = arith.constant 0 : i32
    %c0_i32_1 = arith.constant 0 : i32
    return %c0_i32, %c0_i32_0 : i32, i32
  }
  func.func @transform_5(%arg0: i32, %arg1: i32, %arg2: i32) -> (i32, i32, i32, i32) {
    %c0_i32 = arith.constant 0 : i32
    %c0_i32_0 = arith.constant 0 : i32
    %c0_i32_1 = arith.constant 0 : i32
    return %arg1, %arg0, %c0_i32, %c0_i32_0 : i32, i32, i32, i32
  }
}

</mosaic_0001>

<bundles_post_ra>
// kernel: pointnetfeat2_forward.1
= control target key start
LH: loop header
LB: loop body
LE: loop exit
PB: predicated region body
PF: predicated region fallthrough
CT: control target
= control target key end

     0   :  { %s1134_s18 = smov 0   ;;  %s1136_s19 = smov 0   ;;  %s1289_s0 = inlined_call_operand.vmem [shape: bf16[2,4,384], index: 0, kind: input, shape index: {}]   ;;  %s1290_s1 = inlined_call_operand.vmem [shape: bf16[32,4], index: 1, kind: input, shape index: {}]   ;;  %s1291_s2 = inlined_call_operand.vmem [shape: f32[32,1], index: 2, kind: input, shape index: {}]   ;;  %s1292_s3 = inlined_call_operand.vmem [shape: bf16[64,32], index: 3, kind: input, shape index: {}]   ;;  %s1293_s4 = inlined_call_operand.vmem [shape: f32[64,1], index: 4, kind: input, shape index: {}]   ;;  %s1294_s5 = inlined_call_operand.vmem [shape: f32[2,1,64,1], index: 5, kind: output, shape index: {}]  }
   0x1   :  { %s1138_s20 = smov 0  }
   0x2 LB: > { %s30_s21 = sadd.s32 1, %s1095_s19  ;;  %p986_p0 = scmp.ge.s32.totalorder %s1099_s20, 1  ;;  %s1099_s20 = sphi %s1138_s20, %s15_s20   ;;  %s1095_s19 = sphi %s1136_s19, %s1296_s19   ;;  %s1091_s18 = sphi %s1134_s18, %s1295_s18  }
   0x3   : > { %p32_p1 = scmp.ge.s32.totalorder %s30_s21, 2  ;;  %p219_p2 = scmp.lt.s32.totalorder %s1099_s20, 3 }
   0x5   : > { %s1298_s21 = smov (%p32_p1, %s30_s21), 0  ;;  %p220_p3 = pnand %p986_p0, %p219_p2 }
   0x6   : > { %p258_p4 = scmp.lt.s32.totalorder (!%p220_p3), %s1091_s18, 1  ;;  %v335_v0 = vlaneseq (!%p220_p3)  ;;  %v1071_v1 = vld [vmem:[%s1290_s1] sm:$0xff] (!%p220_p3)   ;;  %v1101_v2 = vmov (!%p220_p3), 1983009808   ;;  %v1102_v4 = vmov (!%p220_p3), 0   ;;  %vm347_vm0 = vcmask (!%p220_p3), 31744  }
   0x7   : > { %223 = sbr.rel (%p220_p3) target bundleno = 658 (0x292), region = 40  ;;  %v333_v3 = vunpack.c.l.s4 (!%p220_p3), %v1101_v2  ;;  %396 = vmatprep.mubr.bf16.mxu0 (!%p220_p3), %v1102_v4  ;;  %1068 = vset.pattern.permute.xlu0 (!%p220_p3), %v1102_v4  ;;  %v296_v6 = vld [vmem:[%s1291_s2] sm:$0xff] (!%p220_p3)  ;;  %v298_v8 = vld [vmem:[%s1291_s2 + $0x10] sm:$0xff] (!%p220_p3)  ;;  %v297_v9 = vld [vmem:[%s1291_s2 + $0x8] sm:$0xff] (!%p220_p3)  ;;  %vm354_vm1 = vcmask (!%p220_p3), 1041408   ;;  %vm560_vm2 = vcmask (!%p220_p3), 261120  }
   0x8   : > { %v336_v5 = vshrl.u32 (!%p220_p3), %v335_v0, 7  ;;  %1023 = vmatprep.mubr.msk.bf16.mxu1 (!%p220_p3), %vm347_vm0, %v1071_v1  ;;  %1069 = vset.pattern.permute.xlu1 (!%p220_p3), %v1102_v4  ;;  %v299_v11 = vld [vmem:[%s1291_s2 + $0x18] sm:$0xff] (!%p220_p3)  ;;  %v492_v12 = vld [vmem:[%s1293_s4] sm:$0xff] (!%p220_p3)  ;;  %v493_v19 = vld [vmem:[%s1293_s4 + $0x8] sm:$0xff] (!%p220_p3)  ;;  %vm282_vm3 = vcmask (!%p220_p3), 7168  }
   0x9   : > { %v334_v7 = vunpack.c.0.s8 (!%p220_p3), %v333_v3  ;;  %302 = vperm.xlu0 (!%p220_p3), %1068, %v296_v6   ;;  %312 = vperm.xlu1 (!%p220_p3), %1069, %v298_v8   ;;  %v1072_v21 = vld [vmem:[%s1290_s1 + $0x8] sm:$0xff] (!%p220_p3)   ;;  %v494_v22 = vld [vmem:[%s1293_s4 + $0x10] sm:$0xff] (!%p220_p3)  ;;  %v495_v23 = vld [vmem:[%s1293_s4 + $0x18] sm:$0xff] (!%p220_p3) }
   0xa   : > { %v496_v24 = vld [vmem:[%s1293_s4 + $0x20] sm:$0xff] (!%p220_p3)  ;;  %v497_v25 = vld [vmem:[%s1293_s4 + $0x28] sm:$0xff] (!%p220_p3)  ;;  %v498_v26 = vld [vmem:[%s1293_s4 + $0x30] sm:$0xff] (!%p220_p3) }
   0xb   : > { %v337_v10 = vsub.s32 (!%p220_p3), %v334_v7, %v336_v5  ;;  %v499_v27 = vld [vmem:[%s1293_s4 + $0x38] sm:$0xff] (!%p220_p3)  ;;  %v1073_v28 = vld [vmem:[%s1292_s3] sm:$0xff] (!%p220_p3)  }
   0xd   : > { %307 = vperm.xlu0 (!%p220_p3), %1068, %v297_v9   ;;  %317 = vperm.xlu1 (!%p220_p3), %1069, %v299_v11   ;;  %v1074_v11 = vld [vmem:[%s1292_s3 + $0x8] sm:$0xff] (!%p220_p3)  }
   0xe   : > { %s1300_s18 = smov (!%p258_p4, %s1091_s18), 1 }
   0xf   : > { %s1040_s28 = smul.u32 6, %s1300_s18  ;;  %s1011_s16 = sshll.u32 %s1300_s18, 6 }
  0x10   : > { %s1256_s23 = scalar_lea.vmem %s1294_s5, %s1011_s16 }
  0x11   : > { %s265_s10 = scalar_lea.vmem %s1289_s0, %s1040_s28  ;;  %502 = vperm.xlu0 %1068, %v492_v12   ;;  %507 = vperm.xlu1 %1069, %v493_v19  }
  0x12   : > { %v291_v13 = vld [vmem:[%s265_s10] sm:$0x3f] }
  0x13   : > { %v338_v14 = vrot.slane %v291_v13, %v337_v10  ;;  %v331_v15 = vcombine.high %v291_v13, %v291_v13  ;;  %v1075_v13 = vld [vmem:[%s1292_s3 + $0x10] sm:$0xff]  }
  0x15   : > { %v346_v16 = vcombine.high %v338_v14, %v338_v14  ;;  %v345_v17 = vrot.slane %v331_v15, %v337_v10  ;;  %v356_v18 = vsel %vm354_vm1, %v338_v14, 0  ;;  %512 = vperm.xlu0 %1068, %v494_v22   ;;  %517 = vperm.xlu1 %1069, %v495_v23   ;;  %v1076_v15 = vld [vmem:[%s1292_s3 + $0x18] sm:$0xff]  }
  0x17   : > { %992 = vmatprep.subr.msk.bf16.mxu0 %vm354_vm1, %v346_v16  ;;  %1039 = vmatprep.subr.msk.bf16.mxu1 %vm354_vm1, %v345_v17  ;;  %v362_v20 = vsel %vm354_vm1, %v345_v17, 0  ;;  %v1103_v16 = vmov -inf   ;;  %v721_v17 = vand.u32 127, %v335_v0 }
  0x18   : > { %365 = vmatpush1.bf16.msra.mxu0 %v356_v18  ;;  %1022 = vmatpush3.bf16.msra.mxu1 %v362_v20  ;;  %283 = vst.msk [vmem:[#allocation2] sm:$0xff] %vm282_vm3, %v1103_v16  ;;  %284 = vst.msk [vmem:[#allocation2 + $0x8] sm:$0xff] %vm282_vm3, %v1103_v16 }
  0x19   : > { %522 = vperm.xlu0 %1068, %v496_v24   ;;  %527 = vperm.xlu1 %1069, %v497_v25   ;;  %285 = vst.msk [vmem:[#allocation2 + $0x10] sm:$0xff] %vm282_vm3, %v1103_v16  ;;  %286 = vst.msk [vmem:[#allocation2 + $0x18] sm:$0xff] %vm282_vm3, %v1103_v16  ;;  %v723_v19 = vadd.s32 256, %v721_v17 }
  0x1a   : > { %287 = vst.msk [vmem:[#allocation2 + $0x20] sm:$0xff] %vm282_vm3, %v1103_v16  ;;  %288 = vst.msk [vmem:[#allocation2 + $0x28] sm:$0xff] %vm282_vm3, %v1103_v16 }
  0x1b   : > { %993 = vmatmul.mubr.msk.bf16.vlgmr.msra.gmra.mrb[0].mxu0 %vm347_vm0, %v1071_v1  ;;  %1024 = vmatmul.mubr.msk.bf16.vlgmr.msra.gmra.mrb[0].mxu1 %vm347_vm0, %v1072_v21  ;;  %289 = vst.msk [vmem:[#allocation2 + $0x30] sm:$0xff] %vm282_vm3, %v1103_v16  ;;  %290 = vst.msk [vmem:[#allocation2 + $0x38] sm:$0xff] %vm282_vm3, %v1103_v16  ;;  %vm727_vm4 = vcmp.lt.s32.totalorder %v723_v19, 300 }
  0x1c   : > { %406 = vmatprep.mubr.bf16.mxu0 %v1102_v4  ;;  %605 = vmatprep.mubr.bf16.mxu1 %v1102_v4 }
  0x1d   : > { %532 = vperm.xlu0 %1068, %v498_v26   ;;  %537 = vperm.xlu1 %1069, %v499_v27  }
  0x23   : > { %994 = vmatmul.mubr.msk.bf16.gmra.mrb[4].mxu0 %vm347_vm0, %v1072_v21 }
  0x24   : > { %1031 = vmatprep.mubr.msk.bf16.mxu0 %vm560_vm2, %v1073_v28 }
  0x88   : > { %v303_v29 = vpop.permute.xlu0 %302  ;;  %v313_v30 = vpop.permute.xlu1 %312 }
  0x8c   : > { %v308_v31 = vpop.permute.xlu0 %307  ;;  %v318_v32 = vpop.permute.xlu1 %317 }
  0x90   : > { %v508_v18 = vpop.permute.xlu1 %507 }
  0x94   : > { %v518_v21 = vpop.permute.xlu1 %517 }
  0xee   : > { %v398_v33 = vpop.f32.mrb[0].mxu0  ;;  %v1025_v34 = vpop.f32.mrb[0].mxu1 }
  0xef   : > { %v399_v35 = vadd.f32 %v398_v33, %v303_v29  ;;  %v460_v36 = vadd.f32 %v1025_v34, %v313_v30  ;;  %v400_v37 = vpop.f32.mrb[1].mxu0  ;;  %v451_v38 = vpop.f32.mrb[1].mxu1 }
  0xf0   : > { %v401_v39 = vadd.f32 %v400_v37, %v303_v29  ;;  %v452_v40 = vadd.f32 %v451_v38, %v303_v29  ;;  %v402_v41 = vpop.f32.mrb[2].mxu0  ;;  %v1026_v42 = vpop.f32.mrb[2].mxu1 }
  0xf1   : > { %v474_v43 = vmax.f32 %v460_v36, 0.0  ;;  %v403_v44 = vadd.f32 %v402_v41, %v308_v31  ;;  %v463_v45 = vadd.f32 %v1026_v42, %v318_v32  ;;  %v404_v46 = vpop.f32.mrb[3].mxu0  ;;  %v454_v47 = vpop.f32.mrb[3].mxu1  ;;  %v466_v51 = vmax.f32 %v399_v35, 0.0 }
  0xf2   : > { %v468_v48 = vmax.f32 %v452_v40, 0.0  ;;  %v405_v49 = vadd.f32 %v404_v46, %v308_v31  ;;  %v455_v50 = vadd.f32 %v454_v47, %v308_v31  ;;  %v467_v54 = vmax.f32 %v401_v39, 0.0  ;;  %v528_v31 = vpop.permute.xlu1 %527 }
  0xf3   : > { %v469_v52 = vmax.f32 %v403_v44, 0.0  ;;  %v477_v53 = vmax.f32 %v463_v45, 0.0 }
  0xf4   : > { %v470_v55 = vmax.f32 %v405_v49, 0.0  ;;  %v471_v56 = vmax.f32 %v455_v50, 0.0 }
  0xf5   : > { %v486_v57 = vpack.c.bf16 %v469_v52, %v466_v51  ;;  %v491_v58 = vpack.c.bf16 %v477_v53, %v474_v43 }
  0xf6   : > { %v487_v59 = vpack.c.bf16 %v470_v55, %v467_v54  ;;  %v488_v60 = vpack.c.bf16 %v471_v56, %v468_v48  ;;  %v408_v61 = vpop.f32.mrb[4].mxu0  ;;  %v538_v48 = vpop.permute.xlu1 %537 }
  0xf7   : > { %v409_v62 = vadd.f32 %v408_v61, %v313_v30  ;;  %v410_v63 = vpop.f32.mrb[5].mxu0 }
  0xf8   : > { %v411_v1 = vadd.f32 %v410_v63, %v313_v30  ;;  %v412_v2 = vpop.f32.mrb[6].mxu0  ;;  %573 = vmatprep.subr.bf16.mxu1 %v487_v59  ;;  %1027 = vmatprep.subr.bf16.mxu0 %v488_v60 }
  0xf9   : > { %v413_v3 = vadd.f32 %v412_v2, %v318_v32  ;;  %v414_v5 = vpop.f32.mrb[7].mxu0  ;;  %574 = vmatpush1.bf16.msra.mxu1 %v486_v57  ;;  %1028 = vmatpush3.bf16.msra.mxu0 %v488_v60  ;;  %v472_v7 = vmax.f32 %v409_v62, 0.0 }
  0xfa   : > { %v415_v6 = vadd.f32 %v414_v5, %v318_v32  ;;  %1029 = vmatprep.subr.bf16.mxu0 %v491_v58  ;;  %v473_v9 = vmax.f32 %v411_v1, 0.0 }
  0xfb   : > { %v475_v8 = vmax.f32 %v413_v3, 0.0 }
  0xfc   : > { %v476_v10 = vmax.f32 %v415_v6, 0.0 }
  0xfd   : > { %v489_v12 = vpack.c.bf16 %v475_v8, %v472_v7  ;;  %1030 = vmatpush3.bf16.msra.mxu0 %v491_v58 }
  0xfe   : > { %v490_v14 = vpack.c.bf16 %v476_v10, %v473_v9 }
 0x100   : > { %575 = vmatprep.subr.bf16.mxu1 %v490_v14  ;;  %1032 = vmatmul.mubr.msk.bf16.vlgmr.msra.gmra.mrb[8].mxu0 %vm560_vm2, %v1074_v11 }
 0x101   : > { %576 = vmatpush1.bf16.msra.mxu1 %v489_v12  ;;  %1035 = vmatprep.mubr.msk.bf16.mxu0 %vm560_vm2, %v1075_v13 }
 0x104   : > { %1001 = vmatmul.mubr.msk.bf16.vlgmr.msra.gmra.mrb[4].mxu1 %vm560_vm2, %v1073_v28 }
 0x105   : > { %615 = vmatprep.mubr.bf16.mxu1 %v1102_v4 }
 0x108   : > { %1036 = vmatmul.mubr.msk.bf16.gmra.mrb[12].mxu0 %vm560_vm2, %v1076_v15 }
 0x10c   : > { %1002 = vmatmul.mubr.msk.bf16.gmra.mrb[8].mxu1 %vm560_vm2, %v1074_v11 }
 0x10d   : > { %625 = vmatprep.mubr.bf16.mxu1 %v1102_v4 }
 0x114   : > { %1003 = vmatmul.mubr.msk.bf16.gmra.mrb[12].mxu1 %vm560_vm2, %v1075_v13 }
 0x115   : > { %635 = vmatprep.mubr.bf16.mxu1 %v1102_v4  ;;  %v503_v4 = vpop.permute.xlu0 %502 }
 0x119   : > { %v513_v20 = vpop.permute.xlu0 %512 }
 0x11c   : > { %1004 = vmatmul.mubr.msk.bf16.gmra.mrb[16].mxu1 %vm560_vm2, %v1076_v15 }
 0x11d   : > { %v523_v25 = vpop.permute.xlu0 %522 }
 0x121   : > { %v533_v42 = vpop.permute.xlu0 %532 }
 0x1d3   : > { %v1033_v22 = vpop.f32.mrb[8].mxu0 }
 0x1d4   : > { %v689_v23 = vadd.f32 %v1033_v22, %v513_v20  ;;  %v680_v24 = vpop.f32.mrb[9].mxu0 }
 0x1d5   : > { %v681_v26 = vadd.f32 %v680_v24, %v503_v4  ;;  %v1034_v27 = vpop.f32.mrb[10].mxu0 }
 0x1d6   : > { %v692_v28 = vadd.f32 %v1034_v27, %v518_v21  ;;  %v683_v29 = vpop.f32.mrb[11].mxu0  ;;  %v736_v30 = vsel %vm727_vm4, %v689_v23, -inf }
 0x1d7   : > { %v684_v32 = vadd.f32 %v683_v29, %v508_v18  ;;  %v607_v33 = vpop.f32.mrb[4].mxu1  ;;  %v730_v0 = vsel %vm727_vm4, %v681_v26, -inf }
 0x1d8   : > { %v608_v34 = vadd.f32 %v607_v33, %v503_v4  ;;  %v609_v35 = vpop.f32.mrb[5].mxu1  ;;  %v739_v36 = vsel %vm727_vm4, %v692_v28, -inf }
 0x1d9   : > { %v610_v37 = vadd.f32 %v609_v35, %v503_v4  ;;  %v611_v38 = vpop.f32.mrb[6].mxu1  ;;  %v733_v39 = vsel %vm727_vm4, %v684_v32, -inf  ;;  %v753_v35 = vld [vmem:[#allocation2 + $0x8] sm:$0xff] }
 0x1da   : > { %v612_v40 = vadd.f32 %v611_v38, %v508_v18  ;;  %v613_v41 = vpop.f32.mrb[7].mxu1 }
 0x1db   : > { %v760_v43 = vmax.f32 %v608_v34, %v610_v37  ;;  %v614_v44 = vadd.f32 %v613_v41, %v508_v18  ;;  %v1037_v45 = vpop.f32.mrb[12].mxu0 }
 0x1dc   : > { %v705_v46 = vadd.f32 %v1037_v45, %v533_v42  ;;  %v696_v47 = vpop.f32.mrb[13].mxu0 }
 0x1dd   : > { %v764_v49 = vmax.f32 %v612_v40, %v614_v44  ;;  %v697_v50 = vadd.f32 %v696_v47, %v523_v25  ;;  %v1038_v51 = vpop.f32.mrb[14].mxu0  ;;  %v761_v52 = vmax.f32 %v760_v43, %v730_v0  ;;  %v752_v0 = vld [vmem:[#allocation2] sm:$0xff]  ;;  %v755_v43 = vld [vmem:[#allocation2 + $0x18] sm:$0xff] }
 0x1de   : > { %v708_v53 = vadd.f32 %v1038_v51, %v538_v48  ;;  %v699_v54 = vpop.f32.mrb[15].mxu0  ;;  %v748_v55 = vsel %vm727_vm4, %v705_v46, -inf  ;;  %v756_v47 = vld [vmem:[#allocation2 + $0x20] sm:$0xff] }
 0x1df   : > { %v700_v56 = vadd.f32 %v699_v54, %v528_v31  ;;  %v617_v57 = vpop.f32.mrb[8].mxu1  ;;  %762 = vmax.xlane.f32.xlu0 %v761_v52  ;;  %v765_v58 = vmax.f32 %v764_v49, %v733_v39  ;;  %v742_v59 = vsel %vm727_vm4, %v697_v50, -inf  ;;  %v754_v39 = vld [vmem:[#allocation2 + $0x10] sm:$0xff]  ;;  %v757_v49 = vld [vmem:[#allocation2 + $0x28] sm:$0xff] }
 0x1e0   : > { %v618_v60 = vadd.f32 %v617_v57, %v513_v20  ;;  %v619_v61 = vpop.f32.mrb[9].mxu1  ;;  %v751_v62 = vsel %vm727_vm4, %v708_v53, -inf  ;;  %v759_v57 = vld [vmem:[#allocation2 + $0x38] sm:$0xff] }
 0x1e1   : > { %v620_v63 = vadd.f32 %v619_v61, %v513_v20  ;;  %v621_v1 = vpop.f32.mrb[10].mxu1  ;;  %766 = vmax.xlane.f32.xlu1 %v765_v58  ;;  %v745_v2 = vsel %vm727_vm4, %v700_v56, -inf }
 0x1e2   : > { %v622_v3 = vadd.f32 %v621_v1, %v518_v21  ;;  %v623_v5 = vpop.f32.mrb[11].mxu1 }
 0x1e3   : > { %v768_v6 = vmax.f32 %v618_v60, %v620_v63  ;;  %v624_v7 = vadd.f32 %v623_v5, %v518_v21 }
 0x1e5   : > { %v772_v8 = vmax.f32 %v622_v3, %v624_v7  ;;  %v769_v9 = vmax.f32 %v768_v6, %v736_v30 }
 0x1e7   : > { %v627_v10 = vpop.f32.mrb[12].mxu1  ;;  %770 = vmax.xlane.f32.xlu0 %v769_v9  ;;  %v773_v11 = vmax.f32 %v772_v8, %v739_v36 }
 0x1e8   : > { %v628_v12 = vadd.f32 %v627_v10, %v523_v25  ;;  %v629_v13 = vpop.f32.mrb[13].mxu1 }
 0x1e9   : > { %v630_v14 = vadd.f32 %v629_v13, %v523_v25  ;;  %v631_v15 = vpop.f32.mrb[14].mxu1 }
 0x1ea   : > { %v632_v16 = vadd.f32 %v631_v15, %v528_v31  ;;  %v633_v4 = vpop.f32.mrb[15].mxu1 }
 0x1eb   : > { %v776_v17 = vmax.f32 %v628_v12, %v630_v14  ;;  %v634_v18 = vadd.f32 %v633_v4, %v528_v31  ;;  %774 = vmax.xlane.f32.xlu0 %v773_v11 }
 0x1ed   : > { %v780_v19 = vmax.f32 %v632_v16, %v634_v18  ;;  %v777_v20 = vmax.f32 %v776_v17, %v742_v59 }
 0x1ef   : > { %v637_v22 = vpop.f32.mrb[16].mxu1  ;;  %778 = vmax.xlane.f32.xlu1 %v777_v20  ;;  %v781_v23 = vmax.f32 %v780_v19, %v745_v2 }
 0x1f0   : > { %v638_v21 = vadd.f32 %v637_v22, %v533_v42  ;;  %v639_v24 = vpop.f32.mrb[17].mxu1 }
 0x1f1   : > { %v640_v26 = vadd.f32 %v639_v24, %v533_v42  ;;  %v641_v27 = vpop.f32.mrb[18].mxu1  ;;  %782 = vmax.xlane.f32.xlu0 %v781_v23 }
 0x1f2   : > { %v642_v28 = vadd.f32 %v641_v27, %v538_v48  ;;  %v643_v29 = vpop.f32.mrb[19].mxu1 }
 0x1f3   : > { %v784_v25 = vmax.f32 %v638_v21, %v640_v26  ;;  %v644_v30 = vadd.f32 %v643_v29, %v538_v48 }
 0x1f5   : > { %v788_v32 = vmax.f32 %v642_v28, %v644_v30  ;;  %v785_v33 = vmax.f32 %v784_v25, %v748_v55  ;;  %v758_v55 = vld [vmem:[#allocation2 + $0x30] sm:$0xff] }
 0x1f7   : > { %786 = vmax.xlane.f32.xlu1 %v785_v33  ;;  %v789_v31 = vmax.f32 %v788_v32, %v751_v62 }
 0x1f9   : > { %790 = vmax.xlane.f32.xlu0 %v789_v31 }
 0x26c   : > { %v763_v34 = vpop.xlane.xlu0 %762 }
 0x26d   : > { %v792_v36 = vmax.f32 %v752_v0, %v763_v34 }
 0x26e   : > { %v767_v37 = vpop.xlane.xlu1 %766 }
 0x26f   : > { %801 = vst.msk [vmem:[#allocation2] sm:$0xff] %vm282_vm3, %v792_v36  ;;  %v793_v38 = vmax.f32 %v753_v35, %v767_v37 }
 0x271   : > { %802 = vst.msk [vmem:[#allocation2 + $0x8] sm:$0xff] %vm282_vm3, %v793_v38 }
 0x274   : > { %v771_v40 = vpop.xlane.xlu0 %770 }
 0x275   : > { %v794_v41 = vmax.f32 %v754_v39, %v771_v40 }
 0x276   : > { %v873_v42 = vld [vmem:[#allocation2] sm:$0xff] }
 0x277   : > { %882 = vst.msk [vmem:[%s1256_s23] sm:$0xff] %vm282_vm3, %v873_v42  ;;  %803 = vst.msk [vmem:[#allocation2 + $0x10] sm:$0xff] %vm282_vm3, %v794_v41 }
 0x278   : > { %v874_v44 = vld [vmem:[#allocation2 + $0x8] sm:$0xff]  ;;  %v775_v45 = vpop.xlane.xlu0 %774 }
 0x279   : > { %883 = vst.msk [vmem:[%s1256_s23 + $0x8] sm:$0xff] %vm282_vm3, %v874_v44  ;;  %v795_v46 = vmax.f32 %v755_v43, %v775_v45 }
 0x27b   : > { %804 = vst.msk [vmem:[#allocation2 + $0x18] sm:$0xff] %vm282_vm3, %v795_v46 }
 0x27c   : > { %v779_v48 = vpop.xlane.xlu1 %778 }
 0x27d   : > { %v796_v50 = vmax.f32 %v756_v47, %v779_v48 }
 0x27e   : > { %v875_v51 = vld [vmem:[#allocation2 + $0x10] sm:$0xff]  ;;  %v783_v52 = vpop.xlane.xlu0 %782 }
 0x27f   : > { %884 = vst.msk [vmem:[%s1256_s23 + $0x10] sm:$0xff] %vm282_vm3, %v875_v51  ;;  %805 = vst.msk [vmem:[#allocation2 + $0x20] sm:$0xff] %vm282_vm3, %v796_v50  ;;  %v797_v53 = vmax.f32 %v757_v49, %v783_v52 }
 0x281   : > { %806 = vst.msk [vmem:[#allocation2 + $0x28] sm:$0xff] %vm282_vm3, %v797_v53 }
 0x282   : > { %v876_v54 = vld [vmem:[#allocation2 + $0x18] sm:$0xff] }
 0x283   : > { %885 = vst.msk [vmem:[%s1256_s23 + $0x18] sm:$0xff] %vm282_vm3, %v876_v54 }
 0x284   : > { %v787_v56 = vpop.xlane.xlu1 %786 }
 0x285   : > { %v798_v58 = vmax.f32 %v758_v55, %v787_v56 }
 0x286   : > { %v877_v59 = vld [vmem:[#allocation2 + $0x20] sm:$0xff]  ;;  %v791_v60 = vpop.xlane.xlu0 %790 }
 0x287   : > { %886 = vst.msk [vmem:[%s1256_s23 + $0x20] sm:$0xff] %vm282_vm3, %v877_v59  ;;  %807 = vst.msk [vmem:[#allocation2 + $0x30] sm:$0xff] %vm282_vm3, %v798_v58  ;;  %v799_v61 = vmax.f32 %v759_v57, %v791_v60 }
 0x288   : > { %v878_v62 = vld [vmem:[#allocation2 + $0x28] sm:$0xff] }
 0x289   : > { %887 = vst.msk [vmem:[%s1256_s23 + $0x28] sm:$0xff] %vm282_vm3, %v878_v62  ;;  %808 = vst.msk [vmem:[#allocation2 + $0x38] sm:$0xff] %vm282_vm3, %v799_v61 }
 0x28e   : > { %v879_v63 = vld [vmem:[#allocation2 + $0x30] sm:$0xff] }
 0x28f   : > { %888 = vst.msk [vmem:[%s1256_s23 + $0x30] sm:$0xff] %vm282_vm3, %v879_v63 }
 0x290   : > { %v880_v1 = vld [vmem:[#allocation2 + $0x38] sm:$0xff] }
 0x291   : > { %889 = vst.msk [vmem:[%s1256_s23 + $0x38] sm:$0xff] %vm282_vm3, %v880_v1 }
 0x292 PF: > { %s15_s20 = sadd.s32 1, %s1099_s20   ;;  %s1295_s18 = smov %s1095_s19 }
 0x293   : > { %p12_p5 = scmp.ge.s32.totalorder %s15_s20, 4   ;;  %s1296_s19 = smov %s1298_s21 }
 0x295   :  { %14 = sbr.rel (!%p12_p5) target bundleno = 2 (0x2), region = 86 }

</bundles_post_ra>
